<compile_context>
chip_gen: v7x
topology: tpu7x:2x2x1
jax: 0.10.0
libtpu: 0.0.40
codegen_flags: <defaults>
</compile_context>

<pallas_src>
import jax
import jax.numpy as jnp
from jax.experimental import pallas as pl
from jax.experimental.pallas import tpu as pltpu

IN_FEATURES = 10
HIDDEN = 10
OUT_FEATURES = 5
LANES = 128  # pad weight feature axes to a full lane width for clean MXU tiles


def toy_model_kernel(x_ref, w1_ref, b1_ref, w2_ref, o_ref):
    # x_ref:  (TB, 10)    -- batch tile of the input
    # w1_ref: (10, 128)   -- W1^T zero-padded on the output axis (col HIDDEN is zero)
    # b1_ref: (1, 128)    -- b1 zero-padded; col HIDDEN == 1.0 (constant-1 lane)
    # w2_ref: (128, 128)  -- W2^T zero-padded; row HIDDEN, cols :5 carry b2
    # o_ref:  (TB, 5)     -- narrow output tile (no lane padding written to HBM)
    x = x_ref[...]
    h = jnp.dot(x, w1_ref[...], preferred_element_type=jnp.float32)   # (TB, 128)
    h = jnp.maximum(h + b1_ref[...], 0.0)                             # ReLU; h[:, HIDDEN] == 1
    y = jnp.dot(h, w2_ref[...], preferred_element_type=jnp.float32)   # (TB, 128); b2 folded in
    o_ref[...] = y[:, :OUT_FEATURES].astype(o_ref.dtype)              # narrow store


def prepare_toy_model_params(w1, b1, w2, b2):
    """Pre-transpose + zero-pad the PyTorch-layout weights once (not per forward).

    w1: (10, 10) = nn.Linear(10,10).weight   b1: (10,)
    w2: (5, 10)  = nn.Linear(10,5).weight    b2: (5,)

    b2 is folded into W2 via a constant-1 hidden lane (index HIDDEN):
      - w1p column HIDDEN is all-zero, b1p[:, HIDDEN] = 1.0  =>  relu(0 + 1) == 1
      - w2p[HIDDEN, :OUT_FEATURES] = b2                       =>  y += 1 * b2
    """
    w1p = jnp.zeros((IN_FEATURES, LANES), jnp.float32).at[:, :HIDDEN].set(w1.T)
    b1p = (jnp.zeros((1, LANES), jnp.float32)
           .at[:, :HIDDEN].set(b1)
           .at[:, HIDDEN].set(1.0))
    w2p = (jnp.zeros((LANES, LANES), jnp.float32)
           .at[:HIDDEN, :OUT_FEATURES].set(w2.T)
           .at[HIDDEN, :OUT_FEATURES].set(b2))
    return w1p, b1p, w2p


def toy_model_forward(x, params, *, tb=8192):
    """x: (B, 10) float32; params from prepare_toy_model_params. Returns (B, 5)."""
    w1p, b1p, w2p = params
    B = x.shape[0]
    # Fat batch tile to amortize per-step overhead. If B < tb, the single block spans
    # the full batch (allowed even when B isn't a multiple of 8); otherwise tb is a
    # multiple of 8 so tiled blocks satisfy the (8,128) constraint.
    TB = min(tb, B)
    grid = (pl.cdiv(B, TB),)

    return pl.pallas_call(
        toy_model_kernel,
        out_shape=jax.ShapeDtypeStruct((B, OUT_FEATURES), jnp.float32),
        grid=grid,
        in_specs=[
            pl.BlockSpec((TB, IN_FEATURES), lambda i: (i, 0)),   # x: tiled over batch
            pl.BlockSpec(w1p.shape, lambda i: (0, 0)),           # weights/bias: resident
            pl.BlockSpec(b1p.shape, lambda i: (0, 0)),
            pl.BlockSpec(w2p.shape, lambda i: (0, 0)),
        ],
        out_specs=pl.BlockSpec((TB, OUT_FEATURES), lambda i: (i, 0)),
        compiler_params=pltpu.CompilerParams(
            dimension_semantics=("parallel",),     # batch axis is embarrassingly parallel
            vmem_limit_bytes=48 * 1024 * 1024,     # TB=8192 double-buffered tiles ~16 MiB
        ),
    )(x, w1p, b1p, w2p)


if __name__ == "__main__":
    key = jax.random.PRNGKey(0)
    k_x, k_w1, k_b1, k_w2, k_b2 = jax.random.split(key, 5)

    # Small shapes consistent with the module's Linear(10,10) -> ReLU -> Linear(10,5).
    B = 8
    x = jax.random.normal(k_x, (B, IN_FEATURES), dtype=jnp.float32)
    w1 = jax.random.uniform(k_w1, (HIDDEN, IN_FEATURES), jnp.float32, -0.3, 0.3)
    b1 = jax.random.uniform(k_b1, (HIDDEN,), jnp.float32, -0.3, 0.3)
    w2 = jax.random.uniform(k_w2, (OUT_FEATURES, HIDDEN), jnp.float32, -0.3, 0.3)
    b2 = jax.random.uniform(k_b2, (OUT_FEATURES,), jnp.float32, -0.3, 0.3)

    params = prepare_toy_model_params(w1, b1, w2, b2)

    # Small-batch run (single grid step).
    out = jax.block_until_ready(toy_model_forward(x, params))
    ref = jnp.maximum(x @ w1.T + b1, 0.0) @ w2.T + b2
    assert out.shape == (B, OUT_FEATURES)
    assert jnp.allclose(out, ref, atol=1e-5, rtol=1e-5)

    # Larger ragged batch: multi-step pipelined grid with a masked tail step.
    B2 = 12000
    x2 = jax.random.normal(jax.random.PRNGKey(1), (B2, IN_FEATURES), dtype=jnp.float32)
    out2 = jax.block_until_ready(toy_model_forward(x2, params))
    ref2 = jnp.maximum(x2 @ w1.T + b1, 0.0) @ w2.T + b2
    assert out2.shape == (B2, OUT_FEATURES)
    assert jnp.allclose(out2, ref2, atol=1e-4, rtol=1e-5)

    # Smaller tile to exercise a longer (>2 step) pipelined grid path.
    out3 = jax.block_until_ready(toy_model_forward(x2, params, tb=2048))
    assert jnp.allclose(out3, ref2, atol=1e-4, rtol=1e-5)

    print("KERNEL_OK")
</pallas_src>

<mosaic_0001>
module attributes {stable_mosaic.version = 11 : i64} {
  func.func @toy_model_kernel(%arg0: i32, %arg1: memref<8x10xf32, #tpu.memory_space<vmem>>, %arg2: memref<10x128xf32, #tpu.memory_space<vmem>>, %arg3: memref<1x128xf32, #tpu.memory_space<vmem>>, %arg4: memref<128x128xf32, #tpu.memory_space<vmem>>, %arg5: memref<8x5xf32, #tpu.memory_space<vmem>>) attributes {dimension_semantics = [#tpu.dimension_semantics<parallel>], iteration_bounds = array<i64: 1>, scalar_prefetch = 0 : i64, scratch_operands = 0 : i64, tpu.core_type = #tpu.core_type<tc>, window_params = [{transform_indices = @transform_0, window_bounds = array<i64: 8, 10>}, {pipeline_mode = #tpu.pipeline_mode<synchronous>, transform_indices = @transform_1, window_bounds = array<i64: 10, 128>}, {pipeline_mode = #tpu.pipeline_mode<synchronous>, transform_indices = @transform_2, window_bounds = array<i64: 1, 128>}, {pipeline_mode = #tpu.pipeline_mode<synchronous>, transform_indices = @transform_3, window_bounds = array<i64: 128, 128>}, {transform_indices = @transform_4, window_bounds = array<i64: 8, 5>}]} {
    %c0 = arith.constant 0 : index
    %c0_0 = arith.constant 0 : index
    %0 = vector.load %arg1[%c0, %c0_0] : memref<8x10xf32, #tpu.memory_space<vmem>>, vector<8x10xf32>
    %c0_1 = arith.constant 0 : index
    %c0_2 = arith.constant 0 : index
    %1 = vector.load %arg2[%c0_1, %c0_2] : memref<10x128xf32, #tpu.memory_space<vmem>>, vector<10x128xf32>
    %cst = arith.constant dense<0.000000e+00> : vector<8x128xf32>
    %2 = tpu.matmul %0, %1, %cst {dimension_numbers = #tpu.dot_dimension_numbers<[1], [0], [0], [1], [0, 0, 1, 1], [], []>} : vector<8x10xf32>, vector<10x128xf32>, vector<8x128xf32> -> vector<8x128xf32>
    %c0_3 = arith.constant 0 : index
    %c0_4 = arith.constant 0 : index
    %3 = vector.load %arg3[%c0_3, %c0_4] : memref<1x128xf32, #tpu.memory_space<vmem>>, vector<1x128xf32>
    %4 = vector.broadcast %3 : vector<1x128xf32> to vector<8x128xf32>
    %5 = arith.addf %2, %4 : vector<8x128xf32>
    %cst_5 = arith.constant 0.000000e+00 : f32
    %6 = vector.broadcast %cst_5 : f32 to vector<8x128xf32>
    %7 = arith.maximumf %5, %6 : vector<8x128xf32>
    %c0_6 = arith.constant 0 : index
    %c0_7 = arith.constant 0 : index
    %8 = vector.load %arg4[%c0_6, %c0_7] : memref<128x128xf32, #tpu.memory_space<vmem>>, vector<128x128xf32>
    %cst_8 = arith.constant dense<0.000000e+00> : vector<8x128xf32>
    %9 = tpu.matmul %7, %8, %cst_8 {dimension_numbers = #tpu.dot_dimension_numbers<[1], [0], [0], [1], [0, 0, 1, 1], [], []>} : vector<8x128xf32>, vector<128x128xf32>, vector<8x128xf32> -> vector<8x128xf32>
    %10 = vector.extract_strided_slice %9 {offsets = [0, 0], sizes = [8, 5], strides = [1, 1]} : vector<8x128xf32> to vector<8x5xf32>
    %c0_9 = arith.constant 0 : index
    %c0_10 = arith.constant 0 : index
    %11 = vector.load %arg5[%c0_9, %c0_10] : memref<8x5xf32, #tpu.memory_space<vmem>>, vector<8x5xf32>
    tpu.vector_store %arg5[%c0_9, %c0_10], %10 {strides = array<i32>} : memref<8x5xf32, #tpu.memory_space<vmem>>, vector<8x5xf32>,
    return
  }
  func.func @transform_0(%arg0: i32) -> (i32, i32) {
    %c0_i32 = arith.constant 0 : i32
    %c0_i32_0 = arith.constant 0 : i32
    return %arg0, %c0_i32 : i32, i32
  }
  func.func @transform_1(%arg0: i32) -> (i32, i32) {
    %c0_i32 = arith.constant 0 : i32
    %c0_i32_0 = arith.constant 0 : i32
    %c0_i32_1 = arith.constant 0 : i32
    return %c0_i32, %c0_i32_0 : i32, i32
  }
  func.func @transform_2(%arg0: i32) -> (i32, i32) {
    %c0_i32 = arith.constant 0 : i32
    %c0_i32_0 = arith.constant 0 : i32
    %c0_i32_1 = arith.constant 0 : i32
    return %c0_i32, %c0_i32_0 : i32, i32
  }
  func.func @transform_3(%arg0: i32) -> (i32, i32) {
    %c0_i32 = arith.constant 0 : i32
    %c0_i32_0 = arith.constant 0 : i32
    %c0_i32_1 = arith.constant 0 : i32
    return %c0_i32, %c0_i32_0 : i32, i32
  }
  func.func @transform_4(%arg0: i32) -> (i32, i32) {
    %c0_i32 = arith.constant 0 : i32
    %c0_i32_0 = arith.constant 0 : i32
    return %arg0, %c0_i32 : i32, i32
  }
}

</mosaic_0001>

<bundles_post_ra>
// kernel: tpu_custom_call.1
= control target key start
LH: loop header
LB: loop body
LE: loop exit
PB: predicated region body
PF: predicated region fallthrough
CT: control target
= control target key end

     0   :  { %9 = vsyncpa [#allocation3], 0  ;;  %s539_s0 = inlined_call_operand.hbm [shape: f32[8,10], index: 0, kind: input, shape index: {}]   ;;  %s540_s1 = inlined_call_operand.hbm [shape: f32[10,128], index: 1, kind: input, shape index: {}]   ;;  %s541_s2 = inlined_call_operand.vmem [shape: f32[1,128], index: 2, kind: input, shape index: {}]   ;;  %s542_s3 = inlined_call_operand.hbm [shape: f32[128,128], index: 3, kind: input, shape index: {}]   ;;  %s543_s4 = inlined_call_operand.hbm [shape: f32[8,5], index: 4, kind: output, shape index: {}]  }
   0x1   :  { %10 = vsyncpa [#allocation6], 0 }
   0x2   :  { %11 = vsyncpa [#allocation4], 0  ;;  %s447_s15 = smov [#allocation5]   ;;  %s353_s19 = scalar_lea.hbm %s540_s1, 256 }
   0x3   :  { %s27_s16 = sshll.u32 %s447_s15, 4  ;;  %p354_p0 = scmp.ne.s32.totalorder %s540_s1, %s353_s19  ;;  %s28_s16 = int_to_ptr.vmem [resolvable:$true] %s27_s16 }
   0x4   :  { %p357_p1 = scmp.lt.u32.totalorder %s353_s19, %s540_s1 }
   0x6   :  { %p359_p2 = pnand %p357_p1, %p354_p0 }
   0x8   :  { %362 = shalt.err (!%p359_p2)
}
   0x9   :  { %s363_s24 = scalar_lea.vmem %s28_s16, 256  ;;  %p368_p4 = scmp.lt.s32.totalorder %s28_s16, %s28_s16 }
   0xa   :  { %p364_p3 = scmp.ne.s32.totalorder %s28_s16, %s363_s24  ;;  %p369_p5 = scmp.lt.s32.totalorder %s363_s24, %s363_s24 }
   0xc   :  { %p370_p6 = por %p369_p5, %p368_p4 }
   0xe   :  { %p371_p7 = pnand %p370_p6, %p364_p3 }
  0x10   :  { %374 = shalt.err (!%p371_p7)
}
  0x11   :  { %s448_s25 = smov 128   ;;  %s449_s26 = smov 8  }
  0x12   :  { %33 = dma.hbm_to_vmem [thread:$0]  %s540_s1, 256, %s28_s16, [#allocation6], %s448_s25, %s448_s25, %s449_s26  }
  0x13   :  { %s450_s29 = smov [#allocation2]   ;;  %s451_s5 = smov [#allocation7]  }
  0x14   :  { %s18_s30 = sshll.u32 %s450_s29, 4  ;;  %s41_s6 = sshll.u32 %s451_s5, 4  ;;  %s19_s30 = int_to_ptr.vmem [resolvable:$true] %s18_s30  ;;  %s42_s6 = int_to_ptr.vmem [resolvable:$true] %s41_s6 }
  0x15   :  { %s375_s9 = scalar_lea.hbm %s539_s0, 128 }
  0x16   :  { %p376_p8 = scmp.ne.s32.totalorder %s539_s0, %s375_s9  ;;  %p379_p9 = scmp.lt.u32.totalorder %s375_s9, %s539_s0 }
  0x18   :  { %p381_p10 = pnand %p379_p9, %p376_p8 }
  0x1a   :  { %384 = shalt.err (!%p381_p10)
}
  0x1b   :  { %s385_s1 = scalar_lea.vmem %s19_s30, 128  ;;  %p390_p12 = scmp.lt.s32.totalorder %s19_s30, %s19_s30 }
  0x1c   :  { %p386_p11 = scmp.ne.s32.totalorder %s19_s30, %s385_s1  ;;  %p391_p13 = scmp.lt.s32.totalorder %s385_s1, %s385_s1 }
  0x1e   :  { %p392_p0 = por %p391_p13, %p390_p12 }
  0x20   :  { %p393_p1 = pnand %p392_p0, %p386_p11 }
  0x22   :  { %396 = shalt.err (!%p393_p1)
}
  0x23   :  { %21 = dma.hbm_to_vmem [thread:$0]  %s539_s0, 128, %s19_s30, [#allocation3]  }
  0x24   :  { %s397_s18 = scalar_lea.hbm %s542_s3, 2048 }
  0x25   :  { %p398_p2 = scmp.ne.s32.totalorder %s542_s3, %s397_s18  ;;  %p401_p3 = scmp.lt.u32.totalorder %s397_s18, %s542_s3 }
  0x27   :  { %p403_p4 = pnand %p401_p3, %p398_p2 }
  0x29   :  { %406 = shalt.err (!%p403_p4)
}
  0x2a   :  { %s407_s23 = scalar_lea.vmem %s42_s6, 2048  ;;  %p412_p6 = scmp.lt.s32.totalorder %s42_s6, %s42_s6 }
  0x2b   :  { %p408_p5 = scmp.ne.s32.totalorder %s42_s6, %s407_s23  ;;  %p413_p7 = scmp.lt.s32.totalorder %s407_s23, %s407_s23 }
  0x2d   :  { %p414_p8 = por %p413_p7, %p412_p6 }
  0x2f   :  { %p415_p9 = pnand %p414_p8, %p408_p5 }
  0x31   :  { %418 = shalt.err (!%p415_p9)
}
  0x32   :  { %47 = dma.hbm_to_vmem [thread:$0]  %s542_s3, 2048, %s42_s6, [#allocation6], %s448_s25, %s448_s25, %s449_s26  }
  0x33   :  { %441 = dma.done.wait [#allocation3], 128  }
  0x34   :  { %442 = vsyncadd [#allocation3], 4294967168 }
  0x35   :  { %443 = dma.done.wait [#allocation6], 2304  }
  0x36   :  { %444 = vsyncadd [#allocation6], 4294964992  ;;  %v452_v0 = vmov 0.0|0.0   ;;  %vm453_vm0 = vmmov 0   ;;  %v454_v1 = vmov 0.0   ;;  %vm71_vm1 = vcmask 1041408  }
  0x37   :  { %315 = vmatprep.subr.bf16.mxu0 %v452_v0  ;;  %319 = vmatprep.subr.bf16.mxu1 %v452_v0  ;;  %v58_v2 = vld [vmem:[#allocation5] sm:$0xff]  ;;  %v59_v3 = vld [vmem:[#allocation5 + $0x8] sm:$0x3]  ;;  %vm455_vm2 = vmmov 1   ;;  %v146_v5 = vld [vmem:[#allocation7] sm:$0xff]  ;;  %vm67_vm4 = vcmask 80896  }
  0x38   :  { %277 = vmatprep.mubr.msk.f32.mxu0 %vm453_vm0, %v454_v1  ;;  %312 = vmatprep.mubr.msk.f32.mxu1 %vm453_vm0, %v454_v1  ;;  %vm317_vm3 = vmpackc.low %vm71_vm1, %vm455_vm2  ;;  %v316_v4 = vpack.c.bf16 %v59_v3, %v58_v2  ;;  %v147_v6 = vld [vmem:[#allocation7 + $0x8] sm:$0xff]  ;;  %v148_v7 = vld [vmem:[#allocation7 + $0x10] sm:$0xff]  ;;  %s456_s26 = smov [#allocation8]   ;;  %vm232_vm5 = vcmask 39936  }
  0x39   :  { %v320_v8 = vpack.c.bf16 %v147_v6, %v146_v5  ;;  %v149_v9 = vld [vmem:[#allocation7 + $0x18] sm:$0xff]  ;;  %v57_v10 = vld [vmem:[#allocation2] sm:$0xff]  ;;  %v150_v12 = vld [vmem:[#allocation7 + $0x20] sm:$0xff]  ;;  %s240_s27 = sshll.u32 %s456_s26, 4  ;;  %s241_s27 = int_to_ptr.vmem [resolvable:$true] %s240_s27 }
  0x3a   :  { %318 = vmatpush3.bf16.msk.msra.mxu0 %vm317_vm3, %v316_v4  ;;  %v323_v11 = vpack.c.bf16 %v149_v9, %v148_v7  ;;  %v151_v13 = vld [vmem:[#allocation7 + $0x28] sm:$0xff]  ;;  %v152_v15 = vld [vmem:[#allocation7 + $0x30] sm:$0xff]  ;;  %v153_v16 = vld [vmem:[#allocation7 + $0x38] sm:$0xff]  ;;  %s419_s28 = scalar_lea.vmem %s241_s27, 128  ;;  %p424_p11 = scmp.lt.s32.totalorder %s241_s27, %s241_s27 }
  0x3b   :  { %321 = vmatpush3.bf16.msra.mxu1 %v320_v8  ;;  %v326_v14 = vpack.c.bf16 %v151_v13, %v150_v12  ;;  %v329_v17 = vpack.c.bf16 %v153_v16, %v152_v15  ;;  %v154_v18 = vld [vmem:[#allocation7 + $0x40] sm:$0xff]  ;;  %v155_v19 = vld [vmem:[#allocation7 + $0x48] sm:$0xff]  ;;  %v156_v21 = vld [vmem:[#allocation7 + $0x50] sm:$0xff]  ;;  %p420_p10 = scmp.ne.s32.totalorder %s241_s27, %s419_s28  ;;  %p425_p12 = scmp.lt.s32.totalorder %s419_s28, %s419_s28 }
  0x3c   :  { %322 = vmatprep.subr.bf16.mxu1 %v452_v0  ;;  %v332_v20 = vpack.c.bf16 %v155_v19, %v154_v18  ;;  %v157_v22 = vld [vmem:[#allocation7 + $0x58] sm:$0xff]  ;;  %v158_v24 = vld [vmem:[#allocation7 + $0x60] sm:$0xff]  ;;  %v159_v25 = vld [vmem:[#allocation7 + $0x68] sm:$0xff] }
  0x3d   :  { %278 = vmatmul.mubr.msk.f32.vlgmr.msra.gmra.mrb[0].mxu0 %vm67_vm4, %v57_v10  ;;  %v335_v23 = vpack.c.bf16 %v157_v22, %v156_v21  ;;  %v338_v26 = vpack.c.bf16 %v159_v25, %v158_v24  ;;  %v160_v27 = vld [vmem:[#allocation7 + $0x70] sm:$0xff]  ;;  %v161_v28 = vld [vmem:[#allocation7 + $0x78] sm:$0xff]  ;;  %v250_v30 = vld [vmem:[%s541_s2] ss:$0 sm:$0xff]  ;;  %p426_p13 = por %p425_p12, %p424_p11 }
  0x3e   :  { %v341_v29 = vpack.c.bf16 %v161_v28, %v160_v27 }
  0x3f   :  { %324 = vmatpush3.bf16.msra.mxu1 %v323_v11  ;;  %p427_p0 = pnand %p426_p13, %p420_p10 }
  0x40   :  { %325 = vmatprep.subr.bf16.mxu1 %v452_v0 }
  0x43   :  { %327 = vmatpush3.bf16.msra.mxu1 %v326_v14 }
  0x44   :  { %328 = vmatprep.subr.bf16.mxu1 %v452_v0 }
  0x47   :  { %330 = vmatpush3.bf16.msra.mxu1 %v329_v17 }
  0x48   :  { %331 = vmatprep.subr.bf16.mxu1 %v452_v0 }
  0x4b   :  { %333 = vmatpush3.bf16.msra.mxu1 %v332_v20 }
  0x4c   :  { %334 = vmatprep.subr.bf16.mxu1 %v452_v0 }
  0x4f   :  { %336 = vmatpush3.bf16.msra.mxu1 %v335_v23 }
  0x50   :  { %337 = vmatprep.subr.bf16.mxu1 %v452_v0 }
  0x53   :  { %339 = vmatpush3.bf16.msra.mxu1 %v338_v26 }
  0x54   :  { %340 = vmatprep.subr.bf16.mxu1 %v452_v0 }
  0x57   :  { %342 = vmatpush3.bf16.msra.mxu1 %v341_v29 }
 0x110   :  { %v141_v31 = vpop.f32.mrb[0].mxu0 }
 0x111   :  { %v142_v32 = vadd.f32 %v250_v30, %v141_v31  ;;  %v279_v33 = vpop.f32.mrb[1].mxu0 }
 0x113   :  { %v145_v34 = vmax.f32 %v142_v32, 0.0 }
 0x115   :  { %313 = vmatmul.mubr.f32.vlgmr.msra.gmra.mrb[0].mxu1 %v145_v34 }
 0x1e8   :  { %v228_v35 = vpop.f32.mrb[0].mxu1 }
 0x1e9   :  { %v314_v36 = vpop.f32.mrb[1].mxu1  ;;  %233 = vst.msk [vmem:[#allocation8] sm:$0xff] %vm232_vm5, %v228_v35 }
 0x1ea   :  { %430 = shalt.err (!%p427_p0)
}
 0x1eb   :  { %s431_s30 = scalar_lea.hbm %s543_s4, 128 }
 0x1ec   :  { %p432_p1 = scmp.ne.s32.totalorder %s543_s4, %s431_s30  ;;  %p435_p2 = scmp.lt.u32.totalorder %s431_s30, %s543_s4 }
 0x1ee   :  { %p437_p3 = pnand %p435_p2, %p432_p1 }
 0x1f0   :  { %440 = shalt.err (!%p437_p3)
}
 0x1f1   :  { %243 = dma.vmem_to_hbm [thread:$0]  %s241_s27, 128, %s543_s4, [#allocation4]  }
 0x1f2   :  { %445 = dma.done.wait [#allocation4], 128  }
 0x1f3   :  { %446 = vsyncadd [#allocation4], 4294967168 }
 0x1f4   :  { %247 = vsyncpa [#allocation3], 1 }
 0x1f5   :  { %248 = vsyncpa [#allocation6], 1 }
 0x1f6   :  { %249 = vsyncpa [#allocation4], 1 }

</bundles_post_ra>
